<compile_context>
chip_gen: v6e
topology: v6e:2x2x1
jax: 0.10.0
libtpu: 0.0.40
codegen_flags: <defaults>
</compile_context>

<pallas_src>
import functools

import jax
import jax.numpy as jnp
from jax.experimental import pallas as pl
from jax.experimental.pallas import tpu as pltpu


def _round_up(n, m):
    return ((n + m - 1) // m) * m


# ---------------------------------------------------------------------------
# Fused kernel: full MLP forward for one batch tile.
# ---------------------------------------------------------------------------
def _mlp_fused_kernel(x_ref, w_ref, b_ref, o_ref):
    # x_ref: (tb, D)  w_ref: (L, D, D)  b_ref: (L, D)  o_ref: (tb, D)
    L = w_ref.shape[0]                 # static -> Python loop fully unrolls
    biases = b_ref[...]                # tiny (L, D) slab, loaded once
    h = x_ref[...].astype(jnp.float32)

    # Hidden blocks: relu(h @ W + b).  BN scale/shift and eval-mode dropout
    # are already folded into W/b on the host.
    # TODO(synk): for non-toy sizes cast matmul operands to bf16 (keep f32
    # accumulation) to hit full MXU throughput on v6e/v7x.
    for i in range(L - 1):
        h = jnp.dot(h, w_ref[i], preferred_element_type=jnp.float32)
        h = jnp.maximum(h + biases[i:i + 1, :], 0.0)

    # Final linear + softmax over the (lane-padded, bias-masked) feature axis.
    logits = jnp.dot(h, w_ref[L - 1], preferred_element_type=jnp.float32)
    logits = logits + biases[L - 1:L, :]
    m = jnp.max(logits, axis=-1, keepdims=True)
    e = jnp.exp(logits - m)
    denom = jnp.sum(e, axis=-1, keepdims=True)
    r = pl.reciprocal(denom, approx=True)      # EUP slot, not a VALU divide
    r = r * (2.0 - denom * r)                  # one Newton step -> ~f32 exact
    o_ref[...] = (e * r).astype(o_ref.dtype)


# ---------------------------------------------------------------------------
# Wrapper: pad to lane-dense shapes, single pallas_call, slice back.
# ---------------------------------------------------------------------------
@functools.partial(jax.jit, static_argnums=(3, 4))
def _forward_impl(x, w_all, b_all, output_dim, tb):
    B, din = x.shape
    L, D, _ = w_all.shape
    Bpad = _round_up(B, tb)
    x_pad = jnp.zeros((Bpad, D), jnp.float32).at[:B, :din].set(
        x.astype(jnp.float32))

    out = pl.pallas_call(
        _mlp_fused_kernel,
        out_shape=jax.ShapeDtypeStruct((Bpad, D), jnp.float32),
        grid=(Bpad // tb,),
        in_specs=[
            pl.BlockSpec((tb, D), lambda i: (i, 0)),        # batch tile of x
            pl.BlockSpec((L, D, D), lambda i: (0, 0, 0)),   # weights resident
            pl.BlockSpec((L, D), lambda i: (0, 0)),         # biases resident
        ],
        out_specs=pl.BlockSpec((tb, D), lambda i: (i, 0)),  # lane-dense out
        compiler_params=pltpu.CompilerParams(
            dimension_semantics=("parallel",)),             # v7x: 2 TCs split batch
    )(x_pad, w_all, b_all)
    return out[:B, :output_dim]


def mlp_classifier_forward(x, w_all, b_all, output_dim):
    B = x.shape[0]
    tb = min(128, _round_up(B, 8))
    return _forward_impl(x, w_all, b_all, output_dim, tb)


# ---------------------------------------------------------------------------
# Parameter construction (deterministic, synthetic) and host-side packing.
# ---------------------------------------------------------------------------
def init_params(key, input_dim, latent_dim, output_dim, n_layers, eps=1e-5):
    """n_layers hidden blocks (Linear+ReLU+BN+Dropout) + final Linear.

    Each hidden block stores (W, b, bn_scale, bn_shift) with the eval-mode
    BatchNorm expressed as a per-feature affine:
        bn_scale = gamma / sqrt(running_var + eps)
        bn_shift = beta - running_mean * bn_scale
    """
    params = {"hidden": [], "final": None}
    dims = [input_dim] + [latent_dim] * n_layers
    for i in range(n_layers):
        key, kw, kb, kg, kbeta, km, kv = jax.random.split(key, 7)
        din, dout = dims[i], dims[i + 1]
        W = jax.random.normal(kw, (din, dout), jnp.float32) * 0.1
        b = jax.random.normal(kb, (dout,), jnp.float32) * 0.1
        gamma = 1.0 + 0.1 * jax.random.normal(kg, (dout,), jnp.float32)
        beta = 0.1 * jax.random.normal(kbeta, (dout,), jnp.float32)
        running_mean = 0.1 * jax.random.normal(km, (dout,), jnp.float32)
        running_var = 1.0 + 0.1 * jax.random.uniform(kv, (dout,), jnp.float32)
        scale = gamma / jnp.sqrt(running_var + eps)
        shift = beta - running_mean * scale
        params["hidden"].append((W, b, scale, shift))
    key, kw, kb = jax.random.split(key, 3)
    Wf = jax.random.normal(kw, (latent_dim, output_dim), jnp.float32) * 0.1
    bf = jax.random.normal(kb, (output_dim,), jnp.float32) * 0.1
    params["final"] = (Wf, bf)
    return params


def pack_params(params, input_dim, latent_dim, output_dim):
    """Fold BN of layer i into layer i+1, pad to 128 lanes, stack into slabs.

    Returns (w_all, b_all) of shapes (L, D, D) and (L, D) with
    D = round_up(max(dims), 128), L = n_hidden + 1.  Padded softmax columns
    of the final bias are set to -1e30 so they vanish after exp().
    """
    D = _round_up(max(input_dim, latent_dim, output_dim), 128)

    # --- fold BN (and identity eval-mode dropout) into the following layer ---
    # y_i = relu(h W_i + b_i) * s_i + sh_i   =>   fold (s_i, sh_i) into layer i+1:
    #   W'_{i+1} = diag(s_i) @ W_{i+1},  b'_{i+1} = b_{i+1} + sh_i @ W_{i+1}
    # TODO(synk): training-mode dropout (stochastic masking) and batch-stat BN
    # are not implemented; eval-mode semantics are used.
    folded = []
    prev_scale, prev_shift = None, None
    for (W, b, scale, shift) in params["hidden"]:
        if prev_scale is None:
            Wn, bn = W, b
        else:
            Wn = prev_scale[:, None] * W
            bn = b + prev_shift @ W
        folded.append((Wn, bn))
        prev_scale, prev_shift = scale, shift
    Wl, bl = params["final"]
    if prev_scale is not None:
        bl = bl + prev_shift @ Wl
        Wl = prev_scale[:, None] * Wl
    folded.append((Wl, bl))

    # --- zero-pad to (D, D)/(D,) and stack ---
    w_list, b_list = [], []
    L = len(folded)
    for idx, (W, b) in enumerate(folded):
        din, dout = W.shape
        Wp = jnp.zeros((D, D), jnp.float32).at[:din, :dout].set(W)
        if idx == L - 1 and dout < D:
            # mask padded logit columns so softmax ignores them
            bp = jnp.full((D,), -1e30, jnp.float32).at[:dout].set(b)
        else:
            bp = jnp.zeros((D,), jnp.float32).at[:dout].set(b)
        w_list.append(Wp)
        b_list.append(bp)
    return jnp.stack(w_list), jnp.stack(b_list)


# ---------------------------------------------------------------------------
# Pure-JAX reference (uses the unfolded params -> also validates the folding).
# ---------------------------------------------------------------------------
def ref_forward(x, params):
    h = x
    for (W, b, scale, shift) in params["hidden"]:
        h = jnp.maximum(h @ W + b, 0.0) * scale + shift
    Wf, bf = params["final"]
    logits = h @ Wf + bf
    return jax.nn.softmax(logits, axis=1)


if __name__ == "__main__":
    input_dim, latent_dim, output_dim = 32, 32, 8
    n_layers = 2
    batch = 8

    key = jax.random.PRNGKey(0)
    key, kx, kp = jax.random.split(key, 3)
    x = jax.random.normal(kx, (batch, input_dim), jnp.float32)
    params = init_params(kp, input_dim, latent_dim, output_dim, n_layers)
    w_all, b_all = pack_params(params, input_dim, latent_dim, output_dim)

    probs = mlp_classifier_forward(x, w_all, b_all, output_dim)
    probs = jax.block_until_ready(probs)

    ref = ref_forward(x, params)
    assert probs.shape == (batch, output_dim)
    assert jnp.allclose(jnp.sum(probs, axis=1), 1.0, atol=1e-5)
    # tolerance accounts for f32 MXU accumulation-order differences vs XLA dot
    assert jnp.allclose(probs, ref, atol=1e-4, rtol=1e-4)

    print("KERNEL_OK")
</pallas_src>

<mosaic_0001>
module attributes {stable_mosaic.version = 11 : i64} {
  func.func @_mlp_fused_kernel(%arg0: i32, %arg1: memref<8x128xf32, #tpu.memory_space<vmem>>, %arg2: memref<3x128x128xf32, #tpu.memory_space<vmem>>, %arg3: memref<3x128xf32, #tpu.memory_space<vmem>>, %arg4: memref<8x128xf32, #tpu.memory_space<vmem>>) attributes {dimension_semantics = [#tpu.dimension_semantics<parallel>], iteration_bounds = array<i64: 1>, scalar_prefetch = 0 : i64, scratch_operands = 0 : i64, tpu.core_type = #tpu.core_type<tc>, window_params = [{transform_indices = @transform_0, window_bounds = array<i64: 8, 128>}, {pipeline_mode = #tpu.pipeline_mode<synchronous>, transform_indices = @transform_1, window_bounds = array<i64: 3, 128, 128>}, {pipeline_mode = #tpu.pipeline_mode<synchronous>, transform_indices = @transform_2, window_bounds = array<i64: 3, 128>}, {transform_indices = @transform_3, window_bounds = array<i64: 8, 128>}]} {
    %c0 = arith.constant 0 : index
    %c0_0 = arith.constant 0 : index
    %0 = vector.load %arg3[%c0, %c0_0] : memref<3x128xf32, #tpu.memory_space<vmem>>, vector<3x128xf32>
    %c0_1 = arith.constant 0 : index
    %c0_2 = arith.constant 0 : index
    %1 = vector.load %arg1[%c0_1, %c0_2] : memref<8x128xf32, #tpu.memory_space<vmem>>, vector<8x128xf32>
    %c0_3 = arith.constant 0 : index
    %c0_4 = arith.constant 0 : index
    %c0_5 = arith.constant 0 : index
    %2 = vector.load %arg2[%c0_3, %c0_4, %c0_5] : memref<3x128x128xf32, #tpu.memory_space<vmem>>, vector<1x128x128xf32>
    %3 = vector.shape_cast %2 : vector<1x128x128xf32> to vector<128x128xf32>
    %cst = arith.constant dense<0.000000e+00> : vector<8x128xf32>
    %4 = tpu.matmul %1, %3, %cst {dimension_numbers = #tpu.dot_dimension_numbers<[1], [0], [0], [1], [0, 0, 1, 1], [], []>} : vector<8x128xf32>, vector<128x128xf32>, vector<8x128xf32> -> vector<8x128xf32>
    %5 = vector.extract_strided_slice %0 {offsets = [0, 0], sizes = [1, 128], strides = [1, 1]} : vector<3x128xf32> to vector<1x128xf32>
    %6 = vector.broadcast %5 : vector<1x128xf32> to vector<8x128xf32>
    %7 = arith.addf %4, %6 : vector<8x128xf32>
    %cst_6 = arith.constant 0.000000e+00 : f32
    %8 = vector.broadcast %cst_6 : f32 to vector<8x128xf32>
    %9 = arith.maximumf %7, %8 : vector<8x128xf32>
    %c1 = arith.constant 1 : index
    %c0_7 = arith.constant 0 : index
    %c0_8 = arith.constant 0 : index
    %10 = vector.load %arg2[%c1, %c0_7, %c0_8] : memref<3x128x128xf32, #tpu.memory_space<vmem>>, vector<1x128x128xf32>
    %11 = vector.shape_cast %10 : vector<1x128x128xf32> to vector<128x128xf32>
    %cst_9 = arith.constant dense<0.000000e+00> : vector<8x128xf32>
    %12 = tpu.matmul %9, %11, %cst_9 {dimension_numbers = #tpu.dot_dimension_numbers<[1], [0], [0], [1], [0, 0, 1, 1], [], []>} : vector<8x128xf32>, vector<128x128xf32>, vector<8x128xf32> -> vector<8x128xf32>
    %13 = vector.extract_strided_slice %0 {offsets = [1, 0], sizes = [1, 128], strides = [1, 1]} : vector<3x128xf32> to vector<1x128xf32>
    %14 = vector.broadcast %13 : vector<1x128xf32> to vector<8x128xf32>
    %15 = arith.addf %12, %14 : vector<8x128xf32>
    %cst_10 = arith.constant 0.000000e+00 : f32
    %16 = vector.broadcast %cst_10 : f32 to vector<8x128xf32>
    %17 = arith.maximumf %15, %16 : vector<8x128xf32>
    %c2 = arith.constant 2 : index
    %c0_11 = arith.constant 0 : index
    %c0_12 = arith.constant 0 : index
    %18 = vector.load %arg2[%c2, %c0_11, %c0_12] : memref<3x128x128xf32, #tpu.memory_space<vmem>>, vector<1x128x128xf32>
    %19 = vector.shape_cast %18 : vector<1x128x128xf32> to vector<128x128xf32>
    %cst_13 = arith.constant dense<0.000000e+00> : vector<8x128xf32>
    %20 = tpu.matmul %17, %19, %cst_13 {dimension_numbers = #tpu.dot_dimension_numbers<[1], [0], [0], [1], [0, 0, 1, 1], [], []>} : vector<8x128xf32>, vector<128x128xf32>, vector<8x128xf32> -> vector<8x128xf32>
    %21 = vector.extract_strided_slice %0 {offsets = [2, 0], sizes = [1, 128], strides = [1, 1]} : vector<3x128xf32> to vector<1x128xf32>
    %22 = vector.broadcast %21 : vector<1x128xf32> to vector<8x128xf32>
    %23 = arith.addf %20, %22 : vector<8x128xf32>
    %cst_14 = arith.constant dense<0xFF800000> : vector<8xf32>
    %24 = vector.multi_reduction <maximumf>, %23, %cst_14 [1] : vector<8x128xf32> to vector<8xf32>
    %25 = vector.shape_cast %24 : vector<8xf32> to vector<8x1xf32>
    %26 = vector.broadcast %25 : vector<8x1xf32> to vector<8x128xf32>
    %27 = arith.subf %23, %26 : vector<8x128xf32>
    %28 = math.exp %27 : vector<8x128xf32>
    %cst_15 = arith.constant dense<0.000000e+00> : vector<8xf32>
    %29 = vector.multi_reduction <add>, %28, %cst_15 [1] : vector<8x128xf32> to vector<8xf32>
    %30 = vector.shape_cast %29 : vector<8xf32> to vector<8x1xf32>
    %31 = tpu.reciprocal %30 {approx = true} : vector<8x1xf32> -> vector<8x1xf32>
    %32 = arith.mulf %30, %31 : vector<8x1xf32>
    %cst_16 = arith.constant 2.000000e+00 : f32
    %33 = vector.broadcast %cst_16 : f32 to vector<8x1xf32>
    %34 = arith.subf %33, %32 : vector<8x1xf32>
    %35 = arith.mulf %31, %34 : vector<8x1xf32>
    %36 = vector.broadcast %35 : vector<8x1xf32> to vector<8x128xf32>
    %37 = arith.mulf %28, %36 : vector<8x128xf32>
    %c0_17 = arith.constant 0 : index
    %c0_18 = arith.constant 0 : index
    %38 = vector.load %arg4[%c0_17, %c0_18] : memref<8x128xf32, #tpu.memory_space<vmem>>, vector<8x128xf32>
    tpu.vector_store %arg4[%c0_17, %c0_18], %37 {strides = array<i32>} : memref<8x128xf32, #tpu.memory_space<vmem>>, vector<8x128xf32>,
    return
  }
  func.func @transform_0(%arg0: i32) -> (i32, i32) {
    %c0_i32 = arith.constant 0 : i32
    %c0_i32_0 = arith.constant 0 : i32
    return %arg0, %c0_i32 : i32, i32
  }
  func.func @transform_1(%arg0: i32) -> (i32, i32, i32) {
    %c0_i32 = arith.constant 0 : i32
    %c0_i32_0 = arith.constant 0 : i32
    %c0_i32_1 = arith.constant 0 : i32
    %c0_i32_2 = arith.constant 0 : i32
    return %c0_i32, %c0_i32_0, %c0_i32_1 : i32, i32, i32
  }
  func.func @transform_2(%arg0: i32) -> (i32, i32) {
    %c0_i32 = arith.constant 0 : i32
    %c0_i32_0 = arith.constant 0 : i32
    %c0_i32_1 = arith.constant 0 : i32
    return %c0_i32, %c0_i32_0 : i32, i32
  }
  func.func @transform_3(%arg0: i32) -> (i32, i32) {
    %c0_i32 = arith.constant 0 : i32
    %c0_i32_0 = arith.constant 0 : i32
    return %arg0, %c0_i32 : i32, i32
  }
}

</mosaic_0001>

<bundles_post_ra>
// kernel: _forward_impl.1
= control target key start
LH: loop header
LB: loop body
LE: loop exit
PB: predicated region body
PF: predicated region fallthrough
CT: control target
= control target key end

     0   :  { %8 = vsyncpa [#allocation3], 0  ;;  %s635_s0 = inlined_call_operand.vmem [shape: f32[8,128], index: 0, kind: input, shape index: {}]   ;;  %s636_s1 = inlined_call_operand.hbm [shape: f32[3,128,128], index: 1, kind: input, shape index: {}]   ;;  %s637_s2 = inlined_call_operand.vmem [shape: f32[3,128], index: 2, kind: input, shape index: {}]   ;;  %s638_s3 = inlined_call_operand.hbm [shape: f32[8,128], index: 3, kind: output, shape index: {}]  }
   0x1   :  { %9 = vsyncpa [#allocation4], 0  ;;  %s543_s12 = smov [#allocation2]  }
   0x2   :  { %s17_s13 = sshll.u32 %s543_s12, 4  ;;  %s18_s13 = int_to_ptr.vmem [resolvable:$true] %s17_s13 }
   0x3   :  { %s507_s14 = scalar_lea.vmem %s18_s13, 6144  ;;  %p512_p1 = scmp.lt.s32.totalorder %s18_s13, %s18_s13 }
   0x4   :  { %p508_p0 = scmp.ne.s32.totalorder %s18_s13, %s507_s14  ;;  %p513_p2 = scmp.lt.s32.totalorder %s507_s14, %s507_s14 }
   0x6   :  { %p514_p3 = por %p513_p2, %p512_p1 }
   0x8   :  { %p515_p4 = pnand %p514_p3, %p508_p0 }
   0xa   :  { %518 = shalt.err (!%p515_p4)
}
   0xb   :  { %s544_s15 = smov 128   ;;  %s545_s16 = smov 8  }
   0xc   :  { %23 = dma.hbm_to_vmem [thread:$0]  %s636_s1, 6144, %s18_s13, [#allocation3], %s544_s15, %s544_s15, %s545_s16  }
   0xd   :  { %539 = dma.done.wait [#allocation3], 6144  }
   0xe   :  { %540 = vsyncadd [#allocation3], 4294961152  ;;  %v546_v0 = vmov 0.0   ;;  %vm547_vm0 = vmmov 0   ;;  %v46_v1 = vld [vmem:[#allocation2 + $0x78] sm:$0xff]  ;;  %v45_v2 = vld [vmem:[#allocation2 + $0x70] sm:$0xff]  ;;  %v47_v47 = vlaneseq }
   0xf   :  { %384 = vmatprep.subr.mxu0 %v546_v0  ;;  %416 = vmatprep.mubr.msk.f32.mxu0 %vm547_vm0, %v546_v0  ;;  %v44_v3 = vld [vmem:[#allocation2 + $0x68] sm:$0xff]  ;;  %v43_v4 = vld [vmem:[#allocation2 + $0x60] sm:$0xff]  ;;  %v138_v5 = vld [vmem:[#allocation2 + $0xf8] sm:$0xff] }
  0x10   :  { %419 = vmatprep.subr.mxu1 %v546_v0  ;;  %451 = vmatprep.mubr.msk.f32.mxu1 %vm547_vm0, %v546_v0  ;;  %v42_v6 = vld [vmem:[#allocation2 + $0x58] sm:$0xff]  ;;  %v137_v7 = vld [vmem:[#allocation2 + $0xf0] sm:$0xff]  ;;  %v136_v8 = vld [vmem:[#allocation2 + $0xe8] sm:$0xff]  ;;  %v48_v48 = vshrl.u32 %v47_v47, 7 }
  0x11   :  { %385 = vmatpush3.msra.mxu0 %v46_v1  ;;  %420 = vmatpush3.msra.mxu1 %v138_v5  ;;  %v41_v9 = vld [vmem:[#allocation2 + $0x50] sm:$0xff]  ;;  %v135_v10 = vld [vmem:[#allocation2 + $0xe0] sm:$0xff]  ;;  %v40_v11 = vld [vmem:[#allocation2 + $0x48] sm:$0xff] }
  0x12   :  { %386 = vmatprep.subr.mxu0 %v546_v0  ;;  %421 = vmatprep.subr.mxu1 %v546_v0  ;;  %v134_v12 = vld [vmem:[#allocation2 + $0xd8] sm:$0xff]  ;;  %v39_v13 = vld [vmem:[#allocation2 + $0x40] sm:$0xff]  ;;  %v133_v14 = vld [vmem:[#allocation2 + $0xd0] sm:$0xff]  ;;  %v49_v49 = vsub.s32 0, %v48_v48  ;;  %v141_v59 = vsub.s32 1, %v48_v48 }
  0x13   :  { %387 = vmatpush3.msra.mxu0 %v45_v2  ;;  %422 = vmatpush3.msra.mxu1 %v137_v7  ;;  %v38_v15 = vld [vmem:[#allocation2 + $0x38] sm:$0xff]  ;;  %v132_v16 = vld [vmem:[#allocation2 + $0xc8] sm:$0xff]  ;;  %v37_v17 = vld [vmem:[#allocation2 + $0x30] sm:$0xff]  ;;  %v233_v2 = vsub.s32 2, %v48_v48 }
  0x14   :  { %388 = vmatprep.subr.mxu0 %v546_v0  ;;  %423 = vmatprep.subr.mxu1 %v546_v0  ;;  %v131_v18 = vld [vmem:[#allocation2 + $0xc0] sm:$0xff]  ;;  %v36_v19 = vld [vmem:[#allocation2 + $0x28] sm:$0xff]  ;;  %v130_v20 = vld [vmem:[#allocation2 + $0xb8] sm:$0xff] }
  0x15   :  { %389 = vmatpush3.msra.mxu0 %v44_v3  ;;  %424 = vmatpush3.msra.mxu1 %v136_v8  ;;  %v35_v21 = vld [vmem:[#allocation2 + $0x20] sm:$0xff]  ;;  %v129_v22 = vld [vmem:[#allocation2 + $0xb0] sm:$0xff]  ;;  %v34_v23 = vld [vmem:[#allocation2 + $0x18] sm:$0xff] }
  0x16   :  { %390 = vmatprep.subr.mxu0 %v546_v0  ;;  %425 = vmatprep.subr.mxu1 %v546_v0  ;;  %v128_v24 = vld [vmem:[#allocation2 + $0xa8] sm:$0xff]  ;;  %v33_v25 = vld [vmem:[#allocation2 + $0x10] sm:$0xff]  ;;  %v127_v26 = vld [vmem:[#allocation2 + $0xa0] sm:$0xff] }
  0x17   :  { %391 = vmatpush3.msra.mxu0 %v43_v4  ;;  %426 = vmatpush3.msra.mxu1 %v135_v10  ;;  %v32_v27 = vld [vmem:[#allocation2 + $0x8] sm:$0xff]  ;;  %v126_v28 = vld [vmem:[#allocation2 + $0x98] sm:$0xff]  ;;  %v31_v29 = vld [vmem:[#allocation2] sm:$0xff] }
  0x18   :  { %392 = vmatprep.subr.mxu0 %v546_v0  ;;  %427 = vmatprep.subr.mxu1 %v546_v0  ;;  %v30_v30 = vld [vmem:[%s635_s0] sm:$0xff]  ;;  %v125_v31 = vld [vmem:[#allocation2 + $0x90] sm:$0xff]  ;;  %v124_v32 = vld [vmem:[#allocation2 + $0x88] sm:$0xff] }
  0x19   :  { %393 = vmatpush3.msra.mxu0 %v42_v6  ;;  %428 = vmatpush3.msra.mxu1 %v134_v12  ;;  %v123_v33 = vld [vmem:[#allocation2 + $0x80] sm:$0xff]  ;;  %v230_v34 = vld [vmem:[#allocation2 + $0x178] sm:$0xff]  ;;  %v229_v35 = vld [vmem:[#allocation2 + $0x170] sm:$0xff] }
  0x1a   :  { %394 = vmatprep.subr.mxu0 %v546_v0  ;;  %429 = vmatprep.subr.mxu1 %v546_v0  ;;  %v228_v36 = vld [vmem:[#allocation2 + $0x168] sm:$0xff]  ;;  %v227_v37 = vld [vmem:[#allocation2 + $0x160] sm:$0xff]  ;;  %v226_v38 = vld [vmem:[#allocation2 + $0x158] sm:$0xff] }
  0x1b   :  { %395 = vmatpush3.msra.mxu0 %v41_v9  ;;  %430 = vmatpush3.msra.mxu1 %v133_v14  ;;  %v225_v39 = vld [vmem:[#allocation2 + $0x150] sm:$0xff]  ;;  %v224_v40 = vld [vmem:[#allocation2 + $0x148] sm:$0xff]  ;;  %v223_v41 = vld [vmem:[#allocation2 + $0x140] sm:$0xff] }
  0x1c   :  { %396 = vmatprep.subr.mxu0 %v546_v0  ;;  %431 = vmatprep.subr.mxu1 %v546_v0  ;;  %v222_v42 = vld [vmem:[#allocation2 + $0x138] sm:$0xff]  ;;  %v221_v43 = vld [vmem:[#allocation2 + $0x130] sm:$0xff]  ;;  %v220_v44 = vld [vmem:[#allocation2 + $0x128] sm:$0xff] }
  0x1d   :  { %397 = vmatpush3.msra.mxu0 %v40_v11  ;;  %432 = vmatpush3.msra.mxu1 %v132_v16  ;;  %v219_v45 = vld [vmem:[#allocation2 + $0x120] sm:$0xff]  ;;  %v218_v46 = vld [vmem:[#allocation2 + $0x118] sm:$0xff]  ;;  %v217_v56 = vld [vmem:[#allocation2 + $0x110] sm:$0xff] }
  0x1e   :  { %398 = vmatprep.subr.mxu0 %v546_v0  ;;  %433 = vmatprep.subr.mxu1 %v546_v0  ;;  %v29_v50 = vld [vmem:[%s637_s2] sm:$0x7]  ;;  %v216_v57 = vld [vmem:[#allocation2 + $0x108] sm:$0xff]  ;;  %s548_s2 = smov [#allocation5]  }
  0x1f   :  { %399 = vmatpush3.msra.mxu0 %v39_v13  ;;  %434 = vmatpush3.msra.mxu1 %v131_v18  ;;  %v50_v51 = vrot.slane %v29_v50, %v49_v49  ;;  %v215_v58 = vld [vmem:[#allocation2 + $0x100] sm:$0xff]  ;;  %v142_v60 = vrot.slane %v29_v50, %v141_v59  ;;  %v234_v3 = vrot.slane %v29_v50, %v233_v2  ;;  %s324_s21 = sshll.u32 %s548_s2, 4  ;;  %s325_s21 = int_to_ptr.vmem [resolvable:$true] %s324_s21 }
  0x20   :  { %400 = vmatprep.subr.mxu0 %v546_v0  ;;  %435 = vmatprep.subr.mxu1 %v546_v0  ;;  %s519_s22 = scalar_lea.vmem %s325_s21, 128  ;;  %p524_p6 = scmp.lt.s32.totalorder %s325_s21, %s325_s21 }
  0x21   :  { %401 = vmatpush3.msra.mxu0 %v38_v15  ;;  %436 = vmatpush3.msra.mxu1 %v130_v20  ;;  %p520_p5 = scmp.ne.s32.totalorder %s325_s21, %s519_s22  ;;  %p525_p7 = scmp.lt.s32.totalorder %s519_s22, %s519_s22 }
  0x22   :  { %402 = vmatprep.subr.mxu0 %v546_v0  ;;  %437 = vmatprep.subr.mxu1 %v546_v0 }
  0x23   :  { %403 = vmatpush3.msra.mxu0 %v37_v17  ;;  %438 = vmatpush3.msra.mxu1 %v129_v22  ;;  %p526_p8 = por %p525_p7, %p524_p6 }
  0x24   :  { %404 = vmatprep.subr.mxu0 %v546_v0  ;;  %439 = vmatprep.subr.mxu1 %v546_v0 }
  0x25   :  { %405 = vmatpush3.msra.mxu0 %v36_v19  ;;  %440 = vmatpush3.msra.mxu1 %v128_v24  ;;  %p527_p9 = pnand %p526_p8, %p520_p5 }
  0x26   :  { %406 = vmatprep.subr.mxu0 %v546_v0  ;;  %441 = vmatprep.subr.mxu1 %v546_v0 }
  0x27   :  { %407 = vmatpush3.msra.mxu0 %v35_v21  ;;  %442 = vmatpush3.msra.mxu1 %v127_v26 }
  0x28   :  { %408 = vmatprep.subr.mxu0 %v546_v0  ;;  %443 = vmatprep.subr.mxu1 %v546_v0 }
  0x29   :  { %409 = vmatpush3.msra.mxu0 %v34_v23  ;;  %444 = vmatpush3.msra.mxu1 %v126_v28 }
  0x2a   :  { %410 = vmatprep.subr.mxu0 %v546_v0  ;;  %445 = vmatprep.subr.mxu1 %v546_v0 }
  0x2b   :  { %411 = vmatpush3.msra.mxu0 %v33_v25  ;;  %446 = vmatpush3.msra.mxu1 %v125_v31 }
  0x2c   :  { %412 = vmatprep.subr.mxu0 %v546_v0  ;;  %447 = vmatprep.subr.mxu1 %v546_v0 }
  0x2d   :  { %413 = vmatpush3.msra.mxu0 %v32_v27  ;;  %448 = vmatpush3.msra.mxu1 %v124_v32 }
  0x2e   :  { %414 = vmatprep.subr.mxu0 %v546_v0  ;;  %449 = vmatprep.subr.mxu1 %v546_v0 }
  0x2f   :  { %415 = vmatpush3.msra.mxu0 %v31_v29  ;;  %450 = vmatpush3.msra.mxu1 %v123_v33 }
  0x30   :  { %417 = vmatmul.mubr.f32.vlgmr.msra.gmra.mxu0 %v30_v30  ;;  %454 = vmatprep.subr.mxu0 %v546_v0 }
  0x31   :  { %486 = vmatprep.mubr.msk.f32.mxu0 %vm547_vm0, %v546_v0  ;;  %455 = vmatpush3.msra.mxu0 %v230_v34 }
  0x32   :  { %456 = vmatprep.subr.mxu0 %v546_v0 }
  0x33   :  { %457 = vmatpush3.msra.mxu0 %v229_v35 }
  0x34   :  { %458 = vmatprep.subr.mxu0 %v546_v0 }
  0x35   :  { %459 = vmatpush3.msra.mxu0 %v228_v36 }
  0x36   :  { %460 = vmatprep.subr.mxu0 %v546_v0 }
  0x37   :  { %461 = vmatpush3.msra.mxu0 %v227_v37 }
  0x38   :  { %462 = vmatprep.subr.mxu0 %v546_v0 }
  0x39   :  { %463 = vmatpush3.msra.mxu0 %v226_v38 }
  0x3a   :  { %464 = vmatprep.subr.mxu0 %v546_v0 }
  0x3b   :  { %465 = vmatpush3.msra.mxu0 %v225_v39 }
  0x3c   :  { %466 = vmatprep.subr.mxu0 %v546_v0 }
  0x3d   :  { %467 = vmatpush3.msra.mxu0 %v224_v40 }
  0x3e   :  { %468 = vmatprep.subr.mxu0 %v546_v0 }
  0x3f   :  { %469 = vmatpush3.msra.mxu0 %v223_v41 }
  0x40   :  { %470 = vmatprep.subr.mxu0 %v546_v0 }
  0x41   :  { %471 = vmatpush3.msra.mxu0 %v222_v42 }
  0x42   :  { %472 = vmatprep.subr.mxu0 %v546_v0 }
  0x43   :  { %473 = vmatpush3.msra.mxu0 %v221_v43 }
  0x44   :  { %474 = vmatprep.subr.mxu0 %v546_v0 }
  0x45   :  { %475 = vmatpush3.msra.mxu0 %v220_v44 }
  0x46   :  { %476 = vmatprep.subr.mxu0 %v546_v0 }
  0x47   :  { %477 = vmatpush3.msra.mxu0 %v219_v45 }
  0x48   :  { %478 = vmatprep.subr.mxu0 %v546_v0 }
  0x49   :  { %479 = vmatpush3.msra.mxu0 %v218_v46 }
  0x4a   :  { %480 = vmatprep.subr.mxu0 %v546_v0 }
  0x4b   :  { %481 = vmatpush3.msra.mxu0 %v217_v56 }
  0x4c   :  { %482 = vmatprep.subr.mxu0 %v546_v0 }
  0x4d   :  { %483 = vmatpush3.msra.mxu0 %v216_v57 }
  0x4e   :  { %484 = vmatprep.subr.mxu0 %v546_v0 }
  0x4f   :  { %485 = vmatpush3.msra.mxu0 %v215_v58 }
  0xf0   :  { %v117_v52 = vpop.f32.mrf.mxu0 }
  0xf1   :  { %v118_v53 = vadd.f32 %v117_v52, %v50_v51 }
  0xf2   :  { %v418_v54 = vpop.f32.mrf.mxu0 }
  0xf3   :  { %v121_v55 = vmax.f32 %v118_v53, 0.0 }
  0xf5   :  { %452 = vmatmul.mubr.f32.vlgmr.msra.gmra.mxu1 %v121_v55 }
 0x1b5   :  { %v209_v61 = vpop.f32.mrf.mxu1 }
 0x1b6   :  { %v210_v62 = vadd.f32 %v209_v61, %v142_v60 }
 0x1b7   :  { %v453_v63 = vpop.f32.mrf.mxu1 }
 0x1b8   :  { %v213_v1 = vmax.f32 %v210_v62, 0.0 }
 0x1ba   :  { %487 = vmatmul.mubr.f32.vlgmr.msra.gmra.mxu0 %v213_v1 }
 0x27a   :  { %v301_v4 = vpop.f32.mrf.mxu0 }
 0x27b   :  { %v302_v5 = vadd.f32 %v301_v4, %v234_v3 }
 0x27c   :  { %v488_v6 = vpop.f32.mrf.mxu0 }
 0x27d   :  { %305 = vmax.xlane.f32.xlu0 %v302_v5 }
 0x306   :  { %v306_v7 = vpop.xlane.xlu0 %305 }
 0x307   :  { %v307_v8 = vsub.f32 %v302_v5, %v306_v7 }
 0x309   :  { %v308_v9 = vmul.f32 1.442695, %v307_v8 }
 0x30b   :  { %495 = vpow2.f32 %v308_v9 }
 0x318   :  { %v496_v0 = vpop.eup %495 }
 0x319   :  { %310 = vadd.xlane.f32.xlu0 %v496_v0 }
 0x3a2   :  { %v311_v10 = vpop.xlane.xlu0 %310 }
 0x3a3   :  { %497 = vrcp.f32 %v311_v10 }
 0x3b0   :  { %v498_v11 = vpop.eup %497 }
 0x3b1   :  { %v313_v12 = vmul.f32 %v498_v11, %v311_v10 }
 0x3b3   :  { %v314_v13 = vsub.f32 2.0, %v313_v12 }
 0x3b5   :  { %v315_v14 = vmul.f32 %v498_v11, %v314_v13 }
 0x3b7   :  { %v316_v15 = vmul.f32 %v496_v0, %v315_v14 }
 0x3b9   :  { %317 = vst [vmem:[#allocation5] sm:$0xff] %v316_v15 }
 0x3ba   :  { %530 = shalt.err (!%p527_p9)
}
 0x3bb   :  { %327 = dma.vmem_to_hbm [thread:$0]  %s325_s21, 128, %s638_s3, [#allocation4]  }
 0x3bc   :  { %541 = dma.done.wait [#allocation4], 128  }
 0x3bd   :  { %542 = vsyncadd [#allocation4], 4294967168 }
 0x3be   :  { %331 = vsyncpa [#allocation3], 1 }
 0x3bf   :  { %332 = vsyncpa [#allocation4], 1 }

</bundles_post_ra>
